<compile_context>
chip_gen: v5e
topology: v5e:2x2
jax: 0.10.0
libtpu: 0.0.40
codegen_flags: <defaults>
</compile_context>

<pallas_src>
import math

import jax
import jax.numpy as jnp
from jax.experimental import pallas as pl
from jax.experimental.pallas import tpu as pltpu

HIDDEN = 84     # fixed by the module (linear1 out_features)
LANE = 128      # TPU lane width
SUBLANE = 8     # f32 sublane packing


def _round_up(n: int, m: int) -> int:
    return ((n + m - 1) // m) * m


def _lenet_classifier_kernel(x_ref, w1_ref, b1_ref, w2_ref, b2_ref, o_ref):
    # One batch tile: fc1 -> tanh -> fc2, entirely on-chip.
    x = x_ref[...].astype(w1_ref.dtype)                                 # in-kernel cast (x is f32 in HBM)
    h = jnp.dot(x, w1_ref[...], preferred_element_type=jnp.float32)    # (tb, 128) f32 MXU accum
    h = jnp.tanh(h + b1_ref[...])                                       # f32 bias + tanh (VPU/EUP)
    h = h.astype(w2_ref.dtype)                                          # explicit operand cast for 2nd dot
    y = jnp.dot(h, w2_ref[...], preferred_element_type=jnp.float32)    # (tb, 128) f32 accum
    y = y + b2_ref[...]
    # Transposed store: (tb,128) -> (128,tb) on the XLU, keep only the real (sublane-padded)
    # output rows.  Store is lane-dense (tb on the lane axis) and ~8x smaller than (tb,128) f32.
    yt = y.T
    o_ref[...] = yt[: o_ref.shape[0], :].astype(o_ref.dtype)


def prepare_lenet_params(w1, b1, w2, b2, out_channels, *, use_bf16=True):
    """One-time weight prep (hoisted out of the per-call path; constant-folds under jit).

    w1: (in_channels, 84)  b1: (84,)  w2: (84, out_channels)  b2: (out_channels,)
    (weights already transposed from PyTorch's (out, in) layout).
    Zero padding is exact: tanh(0) = 0 and zero w2 rows contribute nothing.
    """
    h_pad = _round_up(HIDDEN, LANE)            # 128 — lane-dense hidden activation
    o_lane = _round_up(out_channels, LANE)     # 128 — lane-dense 2nd matmul output (in vregs only)
    o_sub = _round_up(out_channels, SUBLANE)   # e.g. 16 for out_channels=10 — rows actually stored

    w1p = jnp.pad(w1.astype(jnp.float32), ((0, 0), (0, h_pad - HIDDEN)))
    b1p = jnp.pad(b1.astype(jnp.float32), (0, h_pad - HIDDEN)).reshape(1, h_pad)
    w2p = jnp.pad(w2.astype(jnp.float32),
                  ((0, h_pad - HIDDEN), (0, o_lane - out_channels)))
    b2p = jnp.pad(b2.astype(jnp.float32), (0, o_lane - out_channels)).reshape(1, o_lane)
    if use_bf16:
        # bf16 MXU operands (fast path on v6e/v7x); biases / epilogue stay fp32 (safe on v5e).
        w1p = w1p.astype(jnp.bfloat16)
        w2p = w2p.astype(jnp.bfloat16)
    return dict(w1=w1p, b1=b1p, w2=w2p, b2=b2p,
                out_channels=out_channels, o_sub=o_sub)


def _choose_batch_tile(B: int, batch_tile: int) -> int:
    """Lane-aligned batch tile; single full block for small B, >=2 tiles for large B (v7x)."""
    if B <= 2 * LANE:
        return B   # single full-extent block: no (8,128) divisibility constraint applies
    # Lane-aligned tile, capped so the grid has at least 2 tiles (megacore sharding on v7x).
    tb = min(_round_up(batch_tile, LANE), _round_up(pl.cdiv(B, 2), LANE))
    return max(tb, LANE)


def lenet_classifier(x, params, *, batch_tile=2048):
    """Pallas implementation of LeNetClassifier.forward.

    x      : (B, in_channels) float32
    params : output of prepare_lenet_params()
    batch_tile: rows per grid step (multiple of 128 recommended; 2048 default fits every
                generation's default scoped VMEM; 4096-8192 is fine and slightly better on v7x).
    """
    out_channels = params["out_channels"]
    if out_channels <= 0:
        return x   # module returns the input unchanged when out_channels == 0

    B, c_in = x.shape
    o_sub = params["o_sub"]
    tb = _choose_batch_tile(B, batch_tile)
    grid = (pl.cdiv(B, tb),)   # ragged last block is masked by Pallas; no wrapper-side pad of x

    # NOTE: the four resident weight/bias specs could use pipeline_mode=pl.Buffered(1) (constant
    # index_map, never re-fetched); omitted deliberately — the saving is ~0.2 MiB of VMEM and the
    # default buffering is the compile-safe path.
    out_t = pl.pallas_call(
        _lenet_classifier_kernel,
        out_shape=jax.ShapeDtypeStruct((o_sub, B), jnp.float32),
        grid_spec=pltpu.PrefetchScalarGridSpec(
            num_scalar_prefetch=0,
            grid=grid,
            in_specs=[
                pl.BlockSpec((tb, c_in), lambda i: (i, 0)),           # streamed batch tile (f32)
                pl.BlockSpec(params["w1"].shape, lambda i: (0, 0)),   # resident fc1 weight
                pl.BlockSpec(params["b1"].shape, lambda i: (0, 0)),   # resident fc1 bias
                pl.BlockSpec(params["w2"].shape, lambda i: (0, 0)),   # resident fc2 weight
                pl.BlockSpec(params["b2"].shape, lambda i: (0, 0)),   # resident fc2 bias
            ],
            out_specs=pl.BlockSpec((o_sub, tb), lambda i: (0, i)),    # transposed, lane-dense store
        ),
        compiler_params=pltpu.CompilerParams(
            dimension_semantics=("parallel",),   # batch tiles shard across TensorCores on v7x
        ),
    )(x, params["w1"], params["b1"], params["w2"], params["b2"])

    # Tiny (out_channels, B) transpose back in XLA — negligible vs. the saved HBM writes.
    return out_t[:out_channels, :].T


def _init_linear(key, in_features, out_features):
    """Deterministic init mirroring PyTorch nn.Linear default (uniform +/- 1/sqrt(fan_in))."""
    kw, kb = jax.random.split(key)
    bound = 1.0 / math.sqrt(in_features)
    # Stored already transposed: (in_features, out_features).
    w = jax.random.uniform(kw, (in_features, out_features), jnp.float32, -bound, bound)
    b = jax.random.uniform(kb, (out_features,), jnp.float32, -bound, bound)
    return w, b


def reference(x, w1, b1, w2, b2, out_channels):
    if out_channels <= 0:
        return x
    return jnp.tanh(x @ w1 + b1) @ w2 + b2


if __name__ == "__main__":
    in_channels = 32
    out_channels = 10
    batch = 8

    key = jax.random.PRNGKey(0)
    kx, k1, k2, kx2 = jax.random.split(key, 4)

    x = jax.random.normal(kx, (batch, in_channels), jnp.float32)
    w1, b1 = _init_linear(k1, in_channels, HIDDEN)
    w2, b2 = _init_linear(k2, HIDDEN, out_channels)
    y_ref = reference(x, w1, b1, w2, b2, out_channels)

    # fp32-operand path: tight check.
    p32 = prepare_lenet_params(w1, b1, w2, b2, out_channels, use_bf16=False)
    y_f32 = jax.block_until_ready(lenet_classifier(x, p32))
    assert y_f32.shape == (batch, out_channels)
    assert jnp.allclose(y_f32, y_ref, atol=1e-5, rtol=1e-5)

    # bf16-operand fast path (default on v6e/v7x): looser check vs. the fp32 reference.
    p16 = prepare_lenet_params(w1, b1, w2, b2, out_channels, use_bf16=True)
    y_bf16 = jax.block_until_ready(lenet_classifier(x, p16))
    assert y_bf16.shape == (batch, out_channels)
    assert jnp.allclose(y_bf16, y_ref, atol=2e-2, rtol=2e-2)

    # Multi-tile cdiv grid with a ragged last block (exercises the pipelined + masked-edge path).
    x2 = jax.random.normal(kx2, (300, in_channels), jnp.float32)
    y2_ref = reference(x2, w1, b1, w2, b2, out_channels)
    y2 = jax.block_until_ready(lenet_classifier(x2, p32, batch_tile=128))
    assert y2.shape == (300, out_channels)
    assert jnp.allclose(y2, y2_ref, atol=1e-5, rtol=1e-5)

    print("KERNEL_OK")
</pallas_src>

<mosaic_0001>
module attributes {stable_mosaic.version = 11 : i64} {
  func.func @_lenet_classifier_kernel(%arg0: i32, %arg1: memref<8x32xf32, #tpu.memory_space<vmem>>, %arg2: memref<32x128xf32, #tpu.memory_space<vmem>>, %arg3: memref<1x128xf32, #tpu.memory_space<vmem>>, %arg4: memref<128x128xf32, #tpu.memory_space<vmem>>, %arg5: memref<1x128xf32, #tpu.memory_space<vmem>>, %arg6: memref<16x8xf32, #tpu.memory_space<vmem>>) attributes {dimension_semantics = [#tpu.dimension_semantics<parallel>], iteration_bounds = array<i64: 1>, scalar_prefetch = 0 : i64, scratch_operands = 0 : i64, tpu.core_type = #tpu.core_type<tc>, window_params = [{transform_indices = @transform_0, window_bounds = array<i64: 8, 32>}, {pipeline_mode = #tpu.pipeline_mode<synchronous>, transform_indices = @transform_1, window_bounds = array<i64: 32, 128>}, {pipeline_mode = #tpu.pipeline_mode<synchronous>, transform_indices = @transform_2, window_bounds = array<i64: 1, 128>}, {pipeline_mode = #tpu.pipeline_mode<synchronous>, transform_indices = @transform_3, window_bounds = array<i64: 128, 128>}, {pipeline_mode = #tpu.pipeline_mode<synchronous>, transform_indices = @transform_4, window_bounds = array<i64: 1, 128>}, {transform_indices = @transform_5, window_bounds = array<i64: 16, 8>}]} {
    %c0 = arith.constant 0 : index
    %c0_0 = arith.constant 0 : index
    %0 = vector.load %arg1[%c0, %c0_0] : memref<8x32xf32, #tpu.memory_space<vmem>>, vector<8x32xf32>
    %c0_1 = arith.constant 0 : index
    %c0_2 = arith.constant 0 : index
    %1 = vector.load %arg2[%c0_1, %c0_2] : memref<32x128xf32, #tpu.memory_space<vmem>>, vector<32x128xf32>
    %cst = arith.constant dense<0.000000e+00> : vector<8x128xf32>
    %2 = tpu.matmul %0, %1, %cst {dimension_numbers = #tpu.dot_dimension_numbers<[1], [0], [0], [1], [0, 0, 1, 1], [], []>} : vector<8x32xf32>, vector<32x128xf32>, vector<8x128xf32> -> vector<8x128xf32>
    %c0_3 = arith.constant 0 : index
    %c0_4 = arith.constant 0 : index
    %3 = vector.load %arg3[%c0_3, %c0_4] : memref<1x128xf32, #tpu.memory_space<vmem>>, vector<1x128xf32>
    %4 = vector.broadcast %3 : vector<1x128xf32> to vector<8x128xf32>
    %5 = arith.addf %2, %4 : vector<8x128xf32>
    %6 = math.tanh %5 : vector<8x128xf32>
    %c0_5 = arith.constant 0 : index
    %c0_6 = arith.constant 0 : index
    %7 = vector.load %arg4[%c0_5, %c0_6] : memref<128x128xf32, #tpu.memory_space<vmem>>, vector<128x128xf32>
    %cst_7 = arith.constant dense<0.000000e+00> : vector<8x128xf32>
    %8 = tpu.matmul %6, %7, %cst_7 {dimension_numbers = #tpu.dot_dimension_numbers<[1], [0], [0], [1], [0, 0, 1, 1], [], []>} : vector<8x128xf32>, vector<128x128xf32>, vector<8x128xf32> -> vector<8x128xf32>
    %c0_8 = arith.constant 0 : index
    %c0_9 = arith.constant 0 : index
    %9 = vector.load %arg5[%c0_8, %c0_9] : memref<1x128xf32, #tpu.memory_space<vmem>>, vector<1x128xf32>
    %10 = vector.broadcast %9 : vector<1x128xf32> to vector<8x128xf32>
    %11 = arith.addf %8, %10 : vector<8x128xf32>
    %12 = tpu.transpose %11, [1, 0] : vector<8x128xf32> -> vector<128x8xf32>
    %13 = vector.extract_strided_slice %12 {offsets = [0, 0], sizes = [16, 8], strides = [1, 1]} : vector<128x8xf32> to vector<16x8xf32>
    %c0_10 = arith.constant 0 : index
    %c0_11 = arith.constant 0 : index
    %14 = vector.load %arg6[%c0_10, %c0_11] : memref<16x8xf32, #tpu.memory_space<vmem>>, vector<16x8xf32>
    tpu.vector_store %arg6[%c0_10, %c0_11], %13 {strides = array<i32>} : memref<16x8xf32, #tpu.memory_space<vmem>>, vector<16x8xf32>,
    return
  }
  func.func @transform_0(%arg0: i32) -> (i32, i32) {
    %c0_i32 = arith.constant 0 : i32
    %c0_i32_0 = arith.constant 0 : i32
    return %arg0, %c0_i32 : i32, i32
  }
  func.func @transform_1(%arg0: i32) -> (i32, i32) {
    %c0_i32 = arith.constant 0 : i32
    %c0_i32_0 = arith.constant 0 : i32
    %c0_i32_1 = arith.constant 0 : i32
    return %c0_i32, %c0_i32_0 : i32, i32
  }
  func.func @transform_2(%arg0: i32) -> (i32, i32) {
    %c0_i32 = arith.constant 0 : i32
    %c0_i32_0 = arith.constant 0 : i32
    %c0_i32_1 = arith.constant 0 : i32
    return %c0_i32, %c0_i32_0 : i32, i32
  }
  func.func @transform_3(%arg0: i32) -> (i32, i32) {
    %c0_i32 = arith.constant 0 : i32
    %c0_i32_0 = arith.constant 0 : i32
    %c0_i32_1 = arith.constant 0 : i32
    return %c0_i32, %c0_i32_0 : i32, i32
  }
  func.func @transform_4(%arg0: i32) -> (i32, i32) {
    %c0_i32 = arith.constant 0 : i32
    %c0_i32_0 = arith.constant 0 : i32
    %c0_i32_1 = arith.constant 0 : i32
    return %c0_i32, %c0_i32_0 : i32, i32
  }
  func.func @transform_5(%arg0: i32) -> (i32, i32) {
    %c0_i32 = arith.constant 0 : i32
    %c0_i32_0 = arith.constant 0 : i32
    return %c0_i32, %arg0 : i32, i32
  }
}

</mosaic_0001>

<bundles_post_ra>
// kernel: tpu_custom_call.1
= control target key start
LH: loop header
LB: loop body
LE: loop exit
PB: predicated region body
PF: predicated region fallthrough
CT: control target
= control target key end

     0   :  { %10 = vsyncpa [#allocation3], 0  ;;  %s323_s0 = inlined_call_operand.hbm [shape: f32[8,32], index: 0, kind: input, shape index: {}]   ;;  %s324_s1 = inlined_call_operand.hbm [shape: f32[32,128], index: 1, kind: input, shape index: {}]   ;;  %s325_s2 = inlined_call_operand.vmem [shape: f32[1,128], index: 2, kind: input, shape index: {}]   ;;  %s326_s3 = inlined_call_operand.hbm [shape: f32[128,128], index: 3, kind: input, shape index: {}]   ;;  %s327_s4 = inlined_call_operand.vmem [shape: f32[1,128], index: 4, kind: input, shape index: {}]   ;;  %s328_s5 = inlined_call_operand.vmem [shape: f32[16,8], index: 5, kind: output, shape index: {}]  }
   0x1   :  { %11 = vsyncpa [#allocation5], 0  ;;  %s27_s20 = sshll.u32 %s324_s1, 4  ;;  %s267_s21 = smov [#allocation4]   ;;  %s28_s20 = int_to_ptr.hbm [resolvable:$true] %s27_s20 }
   0x2   :  { %s29_s22 = sshll.u32 %s267_s21, 4  ;;  %s17_s25 = sshll.u32 %s323_s0, 4  ;;  %s30_s22 = int_to_ptr.vmem [resolvable:$true] %s29_s22  ;;  %s18_s25 = int_to_ptr.hbm [resolvable:$true] %s17_s25 }
   0x3   :  { %s268_s26 = smov 128   ;;  %s269_s27 = smov 8  }
   0x4   :  { %35 = dma.hbm_to_vmem [thread:$0]  %s28_s20, 512, %s30_s22, [#allocation5], %s268_s26, %s268_s26, %s269_s27  }
   0x5   :  { %s270_s28 = smov [#allocation2]   ;;  %s42_s7 = sshll.u32 %s326_s3, 4  ;;  %s43_s7 = int_to_ptr.hbm [resolvable:$true] %s42_s7 }
   0x6   :  { %s19_s29 = sshll.u32 %s270_s28, 4  ;;  %s271_s1 = smov [#allocation6]   ;;  %s20_s29 = int_to_ptr.vmem [resolvable:$true] %s19_s29 }
   0x7   :  { %22 = dma.hbm_to_vmem [thread:$0]  %s18_s25, 128, %s20_s29, [#allocation3]  }
   0x8   :  { %s44_s8 = sshll.u32 %s271_s1, 4  ;;  %s45_s8 = int_to_ptr.vmem [resolvable:$true] %s44_s8 }
   0x9   :  { %50 = dma.hbm_to_vmem [thread:$0]  %s43_s7, 2048, %s45_s8, [#allocation5], %s268_s26, %s268_s26, %s269_s27  }
   0xa   :  { %263 = dma.done.wait [#allocation3], 128  }
   0xb   :  { %264 = vsyncadd [#allocation3], 4294967168 }
   0xc   :  { %265 = dma.done.wait [#allocation5], 2560  }
   0xd   :  { %266 = vsyncadd [#allocation5], 4294964736  ;;  %v69_v0 = vld [vmem:[#allocation4 + $0x18] sm:$0xff]  ;;  %v68_v1 = vld [vmem:[#allocation4 + $0x10] sm:$0xff]  ;;  %vm74_vm0 = vcmask 261120   ;;  %vm171_vm1 = vcmask 64512  }
   0xe   :  { %90 = vmatpush.msra.mxu0 %v69_v0  ;;  %v114_v2 = vld [vmem:[#allocation6 + $0x78] sm:$0xff]  ;;  %v67_v3 = vld [vmem:[#allocation4 + $0x8] sm:$0xff]  ;;  %v113_v4 = vld [vmem:[#allocation6 + $0x70] sm:$0xff] }
   0xf   :  { %119 = vmatpush.msra.mxu1 %v114_v2  ;;  %v112_v5 = vld [vmem:[#allocation6 + $0x68] sm:$0xff]  ;;  %v66_v6 = vld [vmem:[#allocation4] sm:$0xff]  ;;  %v65_v7 = vld [vmem:[#allocation2] sm:$0xff] }
  0x10   :  { %91 = vmatpush.msra.mxu0 %v68_v1  ;;  %v111_v8 = vld [vmem:[#allocation6 + $0x60] sm:$0xff]  ;;  %v110_v9 = vld [vmem:[#allocation6 + $0x58] sm:$0xff]  ;;  %v109_v10 = vld [vmem:[#allocation6 + $0x50] sm:$0xff] }
  0x11   :  { %120 = vmatpush.msra.mxu1 %v113_v4  ;;  %v108_v11 = vld [vmem:[#allocation6 + $0x48] sm:$0xff]  ;;  %v107_v12 = vld [vmem:[#allocation6 + $0x40] sm:$0xff]  ;;  %v106_v13 = vld [vmem:[#allocation6 + $0x38] sm:$0xff] }
  0x12   :  { %92 = vmatpush.msra.mxu0 %v67_v3  ;;  %v105_v14 = vld [vmem:[#allocation6 + $0x30] sm:$0xff]  ;;  %v104_v15 = vld [vmem:[#allocation6 + $0x28] sm:$0xff]  ;;  %v103_v16 = vld [vmem:[#allocation6 + $0x20] sm:$0xff] }
  0x13   :  { %121 = vmatpush.msra.mxu1 %v112_v5  ;;  %v102_v17 = vld [vmem:[#allocation6 + $0x18] sm:$0xff]  ;;  %v101_v18 = vld [vmem:[#allocation6 + $0x10] sm:$0xff]  ;;  %v100_v19 = vld [vmem:[#allocation6 + $0x8] sm:$0xff] }
  0x14   :  { %93 = vmatpush.msra.mxu0 %v66_v6  ;;  %v99_v20 = vld [vmem:[#allocation6] sm:$0xff]  ;;  %v187_v21 = vld [vmem:[%s325_s2] ss:$0 sm:$0xff] }
  0x15   :  { %180 = vmatmul.msk.f32.vlgmr.msra.gmra.mxu0 %vm74_vm0, %v65_v7  ;;  %122 = vmatpush.msra.mxu1 %v111_v8  ;;  %v188_v25 = vld [vmem:[%s327_s4] ss:$0 sm:$0xff] }
  0x17   :  { %123 = vmatpush.msra.mxu1 %v110_v9 }
  0x19   :  { %124 = vmatpush.msra.mxu1 %v109_v10 }
  0x1b   :  { %125 = vmatpush.msra.mxu1 %v108_v11 }
  0x1d   :  { %126 = vmatpush.msra.mxu1 %v107_v12 }
  0x1f   :  { %127 = vmatpush.msra.mxu1 %v106_v13 }
  0x21   :  { %128 = vmatpush.msra.mxu1 %v105_v14 }
  0x23   :  { %129 = vmatpush.msra.mxu1 %v104_v15 }
  0x25   :  { %130 = vmatpush.msra.mxu1 %v103_v16 }
  0x27   :  { %131 = vmatpush.msra.mxu1 %v102_v17 }
  0x29   :  { %132 = vmatpush.msra.mxu1 %v101_v18 }
  0x2b   :  { %133 = vmatpush.msra.mxu1 %v100_v19 }
  0x2d   :  { %134 = vmatpush.msra.mxu1 %v99_v20 }
  0x92   :  { %v95_v22 = vpop.f32.mrf.mxu0 }
  0x93   :  { %v96_v23 = vadd.f32 %v187_v21, %v95_v22 }
  0x95   :  { %189 = vtanh.f32 %v96_v23 }
  0x9b   :  { %v190_v24 = vpop.eup %189 }
  0x9c   :  { %135 = vmatmul.f32.vlgmr.msra.gmra.mxu1 %v190_v24 }
 0x119   :  { %v136_v26 = vpop.f32.mrf.mxu1 }
 0x11a   :  { %v137_v27 = vadd.f32 %v188_v25, %v136_v26 }
 0x11c   :  { %139 = vxpose.xlu0.b32.start.end [1/1] (short) (narrow) %v137_v27, 16 }
 0x1c0   :  { %v155_v28 = vpop.trf.xlu0 }
 0x1c1   :  { %172 = vst.msk [vmem:[%s328_s5] sm:$0xff] %vm171_vm1, %v155_v28 }
 0x1c8   :  { %v156_v29 = vpop.trf.xlu0 }
 0x1c9   :  { %173 = vst.msk [vmem:[%s328_s5 + $0x8] sm:$0xff] %vm171_vm1, %v156_v29 }
 0x1ca   :  { %178 = vsyncpa [#allocation3], 1 }
 0x1cb   :  { %179 = vsyncpa [#allocation5], 1 }

</bundles_post_ra>
